<compile_context>
chip_gen: v7x
topology: tpu7x:2x2x1
jax: 0.10.0
libtpu: 0.0.40
codegen_flags: <defaults>
</compile_context>

<pallas_src>
import functools

import jax
import jax.numpy as jnp
from jax.experimental import pallas as pl
from jax.experimental.pallas import tpu as pltpu


def attention_head_kernel(*refs, scale, hs, with_dropout):
    if with_dropout:
        x_ref, wqkv_ref, drop_ref, o_ref = refs
    else:
        x_ref, wqkv_ref, o_ref = refs
        drop_ref = None

    x = x_ref[0]                                            # (T, C) bf16

    # Fused Q/K/V projection on the MXU, f32 accumulation.  (T, 3*hs)
    qkv = jnp.dot(x, wqkv_ref[...], preferred_element_type=jnp.float32)
    q = qkv[:, 0:hs] * scale                                # scale on the small tensor
    k = qkv[:, hs:2 * hs]
    v = qkv[:, 2 * hs:3 * hs]

    # Scores: (Q*scale) @ K^T.  dot_general contracts hs vs hs directly
    # (no explicit transpose through the XLU).
    s = jax.lax.dot_general(
        q.astype(jnp.bfloat16), k.astype(jnp.bfloat16),
        dimension_numbers=(((1,), (1,)), ((), ())),
        preferred_element_type=jnp.float32)                 # (T, T)

    # Causal mask built on the fly (equivalent to the registered tril buffer).
    t = s.shape[0]
    row = jax.lax.broadcasted_iota(jnp.int32, (t, t), 0)
    col = jax.lax.broadcasted_iota(jnp.int32, (t, t), 1)
    s = jnp.where(col <= row, s, -1e30)

    # Numerically-stable softmax over keys (one (T,1) reciprocal, (T,T) mul).
    m = jnp.max(s, axis=-1, keepdims=True)
    p = jnp.exp(s - m)
    inv = 1.0 / jnp.sum(p, axis=-1, keepdims=True)
    p = p * inv

    if drop_ref is not None:
        # Inverted dropout: mask is {0, 1/(1-p)} precomputed host-side (bf16).
        p = p * drop_ref[0].astype(jnp.float32)

    out = jnp.dot(p.astype(jnp.bfloat16), v.astype(jnp.bfloat16),
                  preferred_element_type=jnp.float32)       # (T, hs)
    o_ref[0] = out.astype(o_ref.dtype)


def self_attention_head(x, wq, wk, wv, *, dropout_rate=0.2, training=False,
                        dropout_rng=None, compute_dtype=jnp.bfloat16):
    """x: (B, T, C) float32, wq/wk/wv: (C, head_size).  Returns (B, T, head_size)."""
    B, T, C = x.shape
    hs = wq.shape[1]
    scale = 1.0 / float(hs) ** 0.5

    # bf16 MXU inputs (f32 accumulation happens inside the kernel).
    xc = x.astype(compute_dtype)
    wqkv = jnp.concatenate([wq, wk, wv], axis=1).astype(compute_dtype)  # (C, 3*hs)

    with_dropout = bool(training) and dropout_rate > 0.0
    args = [xc, wqkv]
    in_specs = [
        pl.BlockSpec((1, T, C), lambda b: (b, 0, 0)),        # x: full sequence/batch
        pl.BlockSpec((C, 3 * hs), lambda b: (0, 0)),         # fused Wqkv (resident)
    ]
    if with_dropout:
        assert 0.0 < dropout_rate < 1.0, "training dropout requires 0 < p < 1"
        assert dropout_rng is not None, "training=True requires dropout_rng"
        keep = jax.random.bernoulli(dropout_rng, 1.0 - dropout_rate, (B, T, T))
        drop_mask = (keep.astype(jnp.bfloat16)
                     * jnp.bfloat16(1.0 / (1.0 - dropout_rate)))
        args.append(drop_mask)
        in_specs.append(pl.BlockSpec((1, T, T), lambda b: (b, 0, 0)))

    kernel = functools.partial(attention_head_kernel,
                               scale=scale, hs=hs, with_dropout=with_dropout)

    # Explicit VMEM budget: double-buffered blocks + resident weights +
    # in-kernel intermediates, with 2x headroom (floor 8 MiB, cap 64 MiB).
    isz = jnp.dtype(compute_dtype).itemsize
    vmem_bytes = 2 * T * C * isz                     # x block (double-buffered)
    vmem_bytes += 2 * 3 * C * hs * isz               # fused weights
    vmem_bytes += 2 * T * hs * 4                     # out block
    if with_dropout:
        vmem_bytes += 2 * T * T * isz                # dropout mask block
    vmem_bytes += (4 * T * hs + 3 * T * T + T * C) * 4   # QKV, scores, casts
    vmem_bytes = min(max(2 * vmem_bytes, 8 * 1024 * 1024), 64 * 1024 * 1024)

    flops = 2 * B * (3 * T * C * hs + 2 * T * T * hs)
    bytes_accessed = (xc.size * isz + wqkv.size * isz
                      + B * T * hs * 4
                      + (B * T * T * isz if with_dropout else 0))

    out = pl.pallas_call(
        kernel,
        out_shape=jax.ShapeDtypeStruct((B, T, hs), jnp.float32),
        grid=(B,),
        in_specs=in_specs,
        out_specs=pl.BlockSpec((1, T, hs), lambda b: (b, 0, 0)),
        compiler_params=pltpu.CompilerParams(
            dimension_semantics=("parallel",),
            vmem_limit_bytes=int(vmem_bytes)),
        cost_estimate=pl.CostEstimate(flops=int(flops),
                                      transcendentals=int(B * T * T),
                                      bytes_accessed=int(bytes_accessed)),
    )(*args)
    return out


def reference_attention(x, wq, wk, wv, *, drop_mask=None,
                        compute_dtype=jnp.bfloat16):
    """Pure-JAX reference mirroring the kernel math (same bf16 casts / scaling)."""
    hs = wq.shape[1]
    scale = 1.0 / float(hs) ** 0.5
    xc = x.astype(compute_dtype)
    q = jnp.einsum("btc,ch->bth", xc, wq.astype(compute_dtype),
                   preferred_element_type=jnp.float32) * scale
    k = jnp.einsum("btc,ch->bth", xc, wk.astype(compute_dtype),
                   preferred_element_type=jnp.float32)
    v = jnp.einsum("btc,ch->bth", xc, wv.astype(compute_dtype),
                   preferred_element_type=jnp.float32)
    s = jnp.einsum("bqh,bkh->bqk", q.astype(compute_dtype),
                   k.astype(compute_dtype),
                   preferred_element_type=jnp.float32)
    T = x.shape[1]
    row = jnp.arange(T)[:, None]
    col = jnp.arange(T)[None, :]
    s = jnp.where(col <= row, s, -1e30)
    m = jnp.max(s, axis=-1, keepdims=True)
    p = jnp.exp(s - m)
    p = p / jnp.sum(p, axis=-1, keepdims=True)
    if drop_mask is not None:
        p = p * drop_mask.astype(jnp.float32)
    return jnp.einsum("bqk,bkh->bqh", p.astype(compute_dtype),
                      v.astype(compute_dtype),
                      preferred_element_type=jnp.float32)


def reference_attention_f32(x, wq, wk, wv):
    """Full-f32 reference (matches the PyTorch module's eval-mode math)."""
    hs = wq.shape[1]
    T = x.shape[1]
    q = jnp.einsum("btc,ch->bth", x, wq)
    k = jnp.einsum("btc,ch->bth", x, wk)
    v = jnp.einsum("btc,ch->bth", x, wv)
    s = jnp.einsum("bqh,bkh->bqk", q, k) / hs ** 0.5
    row = jnp.arange(T)[:, None]
    col = jnp.arange(T)[None, :]
    s = jnp.where(col <= row, s, -jnp.inf)
    p = jax.nn.softmax(s, axis=-1)
    return jnp.einsum("bqk,bkh->bqh", p, v)


if __name__ == "__main__":
    # Small shapes consistent with the module: C=384, head_size=64, T<=block_size.
    B, T = 2, 64
    C_dim = 384
    num_heads = 6
    head_size = C_dim // num_heads          # 64
    dropout_rate = 0.2

    key = jax.random.PRNGKey(0)
    kx, kq, kk, kv, kd = jax.random.split(key, 5)
    lim = 1.0 / (C_dim ** 0.5)              # nn.Linear default U(-1/sqrt(in), +)
    x = jax.random.normal(kx, (B, T, C_dim), jnp.float32)
    wq = jax.random.uniform(kq, (C_dim, head_size), jnp.float32, -lim, lim)
    wk = jax.random.uniform(kk, (C_dim, head_size), jnp.float32, -lim, lim)
    wv = jax.random.uniform(kv, (C_dim, head_size), jnp.float32, -lim, lim)

    # Eval-mode forward (dropout is identity).
    out_eval = self_attention_head(x, wq, wk, wv,
                                   dropout_rate=dropout_rate, training=False)
    out_eval = jax.block_until_ready(out_eval)
    assert out_eval.shape == (B, T, head_size)

    ref_matched = reference_attention(x, wq, wk, wv)
    assert jnp.allclose(out_eval, ref_matched, atol=5e-3, rtol=5e-3), \
        "mismatch vs matched-precision reference"

    ref_f32 = reference_attention_f32(x, wq, wk, wv)
    assert jnp.allclose(out_eval, ref_f32, atol=1e-1, rtol=1e-1), \
        "mismatch vs f32 reference"

    # Training-mode forward (dropout active, mask precomputed host-side).
    out_train = self_attention_head(x, wq, wk, wv,
                                    dropout_rate=dropout_rate, training=True,
                                    dropout_rng=kd)
    out_train = jax.block_until_ready(out_train)
    keep = jax.random.bernoulli(kd, 1.0 - dropout_rate, (B, T, T))
    drop_mask = keep.astype(jnp.bfloat16) * jnp.bfloat16(1.0 / (1.0 - dropout_rate))
    ref_train = reference_attention(x, wq, wk, wv, drop_mask=drop_mask)
    assert out_train.shape == (B, T, head_size)
    assert jnp.allclose(out_train, ref_train, atol=5e-3, rtol=5e-3), \
        "training-mode mismatch vs matched-precision reference"

    print("KERNEL_OK")
</pallas_src>

<mosaic_0001>
module attributes {stable_mosaic.version = 11 : i64} {
  func.func @attention_head_kernel(%arg0: i32, %arg1: memref<1x64x384xbf16, #tpu.memory_space<vmem>>, %arg2: memref<384x192xbf16, #tpu.memory_space<vmem>>, %arg3: memref<1x64x64xf32, #tpu.memory_space<vmem>>) attributes {dimension_semantics = [#tpu.dimension_semantics<parallel>], iteration_bounds = array<i64: 2>, scalar_prefetch = 0 : i64, scratch_operands = 0 : i64, tpu.core_type = #tpu.core_type<tc>, window_params = [{transform_indices = @transform_0, window_bounds = array<i64: 1, 64, 384>}, {pipeline_mode = #tpu.pipeline_mode<synchronous>, transform_indices = @transform_1, window_bounds = array<i64: 384, 192>}, {transform_indices = @transform_2, window_bounds = array<i64: 1, 64, 64>}]} {
    %c0 = arith.constant 0 : index
    %c0_0 = arith.constant 0 : index
    %c0_1 = arith.constant 0 : index
    %0 = vector.load %arg1[%c0, %c0_0, %c0_1] : memref<1x64x384xbf16, #tpu.memory_space<vmem>>, vector<1x64x384xbf16>
    %1 = vector.shape_cast %0 : vector<1x64x384xbf16> to vector<64x384xbf16>
    %c0_2 = arith.constant 0 : index
    %c0_3 = arith.constant 0 : index
    %2 = vector.load %arg2[%c0_2, %c0_3] : memref<384x192xbf16, #tpu.memory_space<vmem>>, vector<384x192xbf16>
    %cst = arith.constant dense<0.000000e+00> : vector<64x192xf32>
    %3 = tpu.matmul %1, %2, %cst {dimension_numbers = #tpu.dot_dimension_numbers<[1], [0], [0], [1], [0, 0, 1, 1], [], []>} : vector<64x384xbf16>, vector<384x192xbf16>, vector<64x192xf32> -> vector<64x192xf32>
    %4 = vector.extract_strided_slice %3 {offsets = [0, 0], sizes = [64, 64], strides = [1, 1]} : vector<64x192xf32> to vector<64x64xf32>
    %cst_4 = arith.constant 1.250000e-01 : f32
    %5 = vector.broadcast %cst_4 : f32 to vector<64x64xf32>
    %6 = arith.mulf %4, %5 : vector<64x64xf32>
    %7 = vector.extract_strided_slice %3 {offsets = [0, 64], sizes = [64, 64], strides = [1, 1]} : vector<64x192xf32> to vector<64x64xf32>
    %8 = vector.extract_strided_slice %3 {offsets = [0, 128], sizes = [64, 64], strides = [1, 1]} : vector<64x192xf32> to vector<64x64xf32>
    %9 = arith.truncf %6 : vector<64x64xf32> to vector<64x64xbf16>
    %10 = arith.truncf %7 : vector<64x64xf32> to vector<64x64xbf16>
    %cst_5 = arith.constant dense<0.000000e+00> : vector<64x64xf32>
    %11 = tpu.matmul %9, %10, %cst_5 {dimension_numbers = #tpu.dot_dimension_numbers<[1], [1], [0], [0], [0, 0, 1, 0], [], []>} : vector<64x64xbf16>, vector<64x64xbf16>, vector<64x64xf32> -> vector<64x64xf32>
    %12 = tpu.iota {dimensions = array<i32: 0>} : vector<64x64xi32>
    %13 = tpu.iota {dimensions = array<i32: 1>} : vector<64x64xi32>
    %14 = arith.cmpi sle, %13, %12 : vector<64x64xi32>
    %cst_6 = arith.constant -1.000000e+30 : f32
    %15 = vector.broadcast %cst_6 : f32 to vector<64x64xf32>
    %16 = arith.select %14, %11, %15 : vector<64x64xi1>, vector<64x64xf32>
    %cst_7 = arith.constant dense<0xFF800000> : vector<64xf32>
    %17 = vector.multi_reduction <maximumf>, %16, %cst_7 [1] : vector<64x64xf32> to vector<64xf32>
    %18 = vector.shape_cast %17 : vector<64xf32> to vector<64x1xf32>
    %19 = vector.broadcast %18 : vector<64x1xf32> to vector<64x64xf32>
    %20 = arith.subf %16, %19 : vector<64x64xf32>
    %21 = math.exp %20 : vector<64x64xf32>
    %cst_8 = arith.constant dense<0.000000e+00> : vector<64xf32>
    %22 = vector.multi_reduction <add>, %21, %cst_8 [1] : vector<64x64xf32> to vector<64xf32>
    %23 = vector.shape_cast %22 : vector<64xf32> to vector<64x1xf32>
    %cst_9 = arith.constant 1.000000e+00 : f32
    %24 = vector.broadcast %cst_9 : f32 to vector<64x1xf32>
    %25 = arith.divf %24, %23 : vector<64x1xf32>
    %26 = vector.broadcast %25 : vector<64x1xf32> to vector<64x64xf32>
    %27 = arith.mulf %21, %26 : vector<64x64xf32>
    %28 = arith.truncf %27 : vector<64x64xf32> to vector<64x64xbf16>
    %29 = arith.truncf %8 : vector<64x64xf32> to vector<64x64xbf16>
    %cst_10 = arith.constant dense<0.000000e+00> : vector<64x64xf32>
    %30 = tpu.matmul %28, %29, %cst_10 {dimension_numbers = #tpu.dot_dimension_numbers<[1], [0], [0], [1], [0, 0, 1, 1], [], []>} : vector<64x64xbf16>, vector<64x64xbf16>, vector<64x64xf32> -> vector<64x64xf32>
    %c0_11 = arith.constant 0 : index
    %c0_12 = arith.constant 0 : index
    %c0_13 = arith.constant 0 : index
    %31 = vector.load %arg3[%c0_11, %c0_12, %c0_13] : memref<1x64x64xf32, #tpu.memory_space<vmem>>, vector<1x64x64xf32>
    %32 = vector.shape_cast %31 : vector<1x64x64xf32> to vector<64x64xf32>
    %33 = vector.shape_cast %30 : vector<64x64xf32> to vector<1x64x64xf32>
    tpu.vector_store %arg3[%c0_11, %c0_12, %c0_13], %33 {strides = array<i32>} : memref<1x64x64xf32, #tpu.memory_space<vmem>>, vector<1x64x64xf32>,
    return
  }
  func.func @transform_0(%arg0: i32) -> (i32, i32, i32) {
    %c0_i32 = arith.constant 0 : i32
    %c0_i32_0 = arith.constant 0 : i32
    %c0_i32_1 = arith.constant 0 : i32
    return %arg0, %c0_i32, %c0_i32_0 : i32, i32, i32
  }
  func.func @transform_1(%arg0: i32) -> (i32, i32) {
    %c0_i32 = arith.constant 0 : i32
    %c0_i32_0 = arith.constant 0 : i32
    %c0_i32_1 = arith.constant 0 : i32
    return %c0_i32, %c0_i32_0 : i32, i32
  }
  func.func @transform_2(%arg0: i32) -> (i32, i32, i32) {
    %c0_i32 = arith.constant 0 : i32
    %c0_i32_0 = arith.constant 0 : i32
    %c0_i32_1 = arith.constant 0 : i32
    return %arg0, %c0_i32, %c0_i32_0 : i32, i32, i32
  }
}

</mosaic_0001>

<bundles_post_ra>
// kernel: tpu_custom_call.1
= control target key start
LH: loop header
LB: loop body
LE: loop exit
PB: predicated region body
PF: predicated region fallthrough
CT: control target
= control target key end

     0   :  { %7 = vsyncpa [#allocation3], 0  ;;  %s1776_s0 = inlined_call_operand.vmem [shape: bf16[2,64,384], index: 0, kind: input, shape index: {}]   ;;  %s1777_s1 = inlined_call_operand.vmem [shape: bf16[384,192], index: 1, kind: input, shape index: {}]   ;;  %s1778_s2 = inlined_call_operand.hbm [shape: f32[2,64,64], index: 2, kind: output, shape index: {}]  }
   0x1   :  { %9 = vsyncpa [#allocation3 + $0x1], 0  ;;  %s1463_s9 = smov 0   ;;  %s1465_s10 = smov 0  }
   0x2   :  { %s1467_s11 = smov 0   ;;  %s1469_s12 = smov 0  }
   0x3 LB: > { %s1484_s13 = sadd.s32 4294967295, %s1441_s12   ;;  %s1067_s14 = sadd.s32 4294967294, %s1441_s12   ;;  %s1441_s12 = sphi %s1469_s12, %s1784_s12   ;;  %s1437_s11 = sphi %s1467_s11, %s1783_s11   ;;  %s1433_s10 = sphi %s1465_s10, %s1782_s10   ;;  %s1429_s9 = sphi %s1463_s9, %s1781_s9  }
   0x4   : > { %s1488_s15 = sadd.s32 1, %s1441_s12   ;;  %s69_s16 = sadd.s32 1, %s1437_s11 }
   0x5   : > { %s66_s17 = ssub.s32 %s1441_s12, %s1488_s15  ;;  %p79_p0 = scmp.ne.s32.totalorder %s1437_s11, %s1433_s10 }
   0x6   : > { %p67_p1 = scmp.eq.s32.totalorder %s66_s17, 0  ;;  %p80_p2 = scmp.eq.s32.totalorder %s1484_s13, 1 }
   0x7   : > { %p85_p3 = scmp.ne.s32.totalorder %s1433_s10, %s1429_s9  ;;  %p86_p4 = scmp.eq.s32.totalorder %s1067_s14, 1 }
   0x8   : > { %s1499_s18 = scalar_select %p67_p1, %s1437_s11, %s69_s16  }
   0x9   : > { %p1501_p5 = por %p80_p2, %p79_p0  ;;  %p1505_p6 = por %p86_p4, %p85_p3 }
   0xa   : > { %p1070_p7 = scmp.ge.s32.totalorder %s1441_s12, 1  ;;  %p115_p8 = scmp.lt.s32.totalorder %s1441_s12, 3 }
   0xc   : > { %p116_p9 = pnand %p1070_p7, %p115_p8 }
   0xd   : > { %v1259_v0 = vld [vmem:[%s1777_s1 + $0x4] ss:$8 sps:$4 sm:$0xff] (!%p116_p9)   ;;  %v1261_v1 = vld [vmem:[%s1777_s1] ss:$8 sps:$4 sm:$0xff] (!%p116_p9)   ;;  %v1443_v2 = vmov (!%p116_p9), 0   ;;  %p137_p10 = scmp.lt.s32.totalorder (!%p116_p9), %s1484_s13, 1 }
   0xe   : > { %119 = sbr.rel (%p116_p9) target bundleno = 1221 (0x4c5), region = 28  ;;  %616 = vmatprep.mubr.bf16.mxu1 (!%p116_p9), %v1443_v2  ;;  %511 = vmatprep.subr.bf16.mxu0 (!%p116_p9), %v1259_v0  ;;  %v1262_v3 = vld [vmem:[%s1777_s1 + $0x14] ss:$8 sps:$4 sm:$0xff] (!%p116_p9)   ;;  %v1264_v4 = vld [vmem:[%s1777_s1 + $0x10] ss:$8 sps:$4 sm:$0xff] (!%p116_p9)   ;;  %vm685_vm0 = vcmask (!%p116_p9), 523264  }
   0xf   : > { %512 = vmatpush1.bf16.msra.mxu0 (!%p116_p9), %v1261_v1  ;;  %v1265_v5 = vld [vmem:[%s1777_s1 + $0x24] ss:$8 sps:$4 sm:$0xff] (!%p116_p9)   ;;  %v1267_v6 = vld [vmem:[%s1777_s1 + $0x20] ss:$8 sps:$4 sm:$0xff] (!%p116_p9)   ;;  %v1268_v7 = vld [vmem:[%s1777_s1 + $0x34] ss:$8 sps:$4 sm:$0xff] (!%p116_p9)  }
  0x10   : > { %513 = vmatprep.subr.bf16.mxu0 (!%p116_p9), %v1262_v3  ;;  %v1270_v8 = vld [vmem:[%s1777_s1 + $0x30] ss:$8 sps:$4 sm:$0xff] (!%p116_p9)   ;;  %v1283_v9 = vld [vmem:[%s1777_s1 + $0x104] ss:$8 sps:$4 sm:$0xff] (!%p116_p9)   ;;  %v1285_v10 = vld [vmem:[%s1777_s1 + $0x100] ss:$8 sps:$4 sm:$0xff] (!%p116_p9)  }
  0x11   : > { %v1271_v11 = vld [vmem:[%s1777_s1 + $0x44] ss:$8 sps:$4 sm:$0xff] (!%p116_p9)   ;;  %584 = vmatprep.subr.bf16.mxu1 (!%p116_p9), %v1283_v9  ;;  %v1289_v12 = vld [vmem:[%s1777_s1 + $0x114] ss:$8 sps:$4 sm:$0xff] (!%p116_p9)   ;;  %v1291_v13 = vld [vmem:[%s1777_s1 + $0x110] ss:$8 sps:$4 sm:$0xff] (!%p116_p9)  }
  0x12   : > { %585 = vmatpush1.bf16.msra.mxu1 (!%p116_p9), %v1285_v10  ;;  %v1273_v14 = vld [vmem:[%s1777_s1 + $0x40] ss:$8 sps:$4 sm:$0xff] (!%p116_p9)   ;;  %v1274_v15 = vld [vmem:[%s1777_s1 + $0x54] ss:$8 sps:$4 sm:$0xff] (!%p116_p9)   ;;  %v1295_v16 = vld [vmem:[%s1777_s1 + $0x124] ss:$8 sps:$4 sm:$0xff] (!%p116_p9)  }
  0x13   : > { %514 = vmatpush1.bf16.msra.mxu0 (!%p116_p9), %v1264_v4  ;;  %586 = vmatprep.subr.bf16.mxu1 (!%p116_p9), %v1289_v12  ;;  %v1297_v17 = vld [vmem:[%s1777_s1 + $0x120] ss:$8 sps:$4 sm:$0xff] (!%p116_p9)   ;;  %v1276_v18 = vld [vmem:[%s1777_s1 + $0x50] ss:$8 sps:$4 sm:$0xff] (!%p116_p9)   ;;  %v1301_v19 = vld [vmem:[%s1777_s1 + $0x134] ss:$8 sps:$4 sm:$0xff] (!%p116_p9)  }
  0x14   : > { %515 = vmatprep.subr.bf16.mxu0 (!%p116_p9), %v1265_v5  ;;  %v1277_v20 = vld [vmem:[%s1777_s1 + $0x64] ss:$8 sps:$4 sm:$0xff] (!%p116_p9)   ;;  %v1303_v21 = vld [vmem:[%s1777_s1 + $0x130] ss:$8 sps:$4 sm:$0xff] (!%p116_p9)   ;;  %v1279_v22 = vld [vmem:[%s1777_s1 + $0x60] ss:$8 sps:$4 sm:$0xff] (!%p116_p9)  }
  0x15   : > { %v1307_v23 = vld [vmem:[%s1777_s1 + $0x144] ss:$8 sps:$4 sm:$0xff]   ;;  %s138_s29 = scalar_select %p137_p10, %s1484_s13, 1  ;;  %v1280_v24 = vld [vmem:[%s1777_s1 + $0x74] ss:$8 sps:$4 sm:$0xff]  }
  0x16   : > { %587 = vmatpush1.bf16.msra.mxu1 %v1291_v13  ;;  %v1309_v25 = vld [vmem:[%s1777_s1 + $0x140] ss:$8 sps:$4 sm:$0xff]   ;;  %v1282_v26 = vld [vmem:[%s1777_s1 + $0x70] ss:$8 sps:$4 sm:$0xff]   ;;  %v1313_v27 = vld [vmem:[%s1777_s1 + $0x154] ss:$8 sps:$4 sm:$0xff]  }
  0x17   : > { %516 = vmatpush1.bf16.msra.mxu0 %v1267_v6  ;;  %588 = vmatprep.subr.bf16.mxu1 %v1295_v16  ;;  %s1215_s16 = smul.u32 96, %s138_s29  ;;  %v1286_v28 = vld [vmem:[%s1777_s1 + $0x84] ss:$8 sps:$4 sm:$0xff]   ;;  %v1315_v29 = vld [vmem:[%s1777_s1 + $0x150] ss:$8 sps:$4 sm:$0xff]   ;;  %s134_s28 = sand.u32 1, %s1433_s10  }
  0x18   : > { %517 = vmatprep.subr.bf16.mxu0 %v1268_v7  ;;  %v1288_v30 = vld [vmem:[%s1777_s1 + $0x80] ss:$8 sps:$4 sm:$0xff]   ;;  %v1319_v31 = vld [vmem:[%s1777_s1 + $0x164] ss:$8 sps:$4 sm:$0xff]   ;;  %v1292_v32 = vld [vmem:[%s1777_s1 + $0x94] ss:$8 sps:$4 sm:$0xff]  }
  0x19   : > { %s1610_s30 = scalar_lea.vmem %s1776_s0, %s1215_s16  ;;  %v1294_v33 = vld [vmem:[%s1777_s1 + $0x90] ss:$8 sps:$4 sm:$0xff]   ;;  %v1321_v34 = vld [vmem:[%s1777_s1 + $0x160] ss:$8 sps:$4 sm:$0xff]   ;;  %v1325_v36 = vld [vmem:[%s1777_s1 + $0x174] ss:$8 sps:$4 sm:$0xff]  }
  0x1a   : > { %589 = vmatpush1.bf16.msra.mxu1 %v1297_v17  ;;  %v1334_v35 = vld [vmem:[%s1610_s30 + $0x4] ss:$12 sps:$4 sm:$0xff]   ;;  %v1300_v39 = vld [vmem:[%s1777_s1 + $0xa0] ss:$8 sps:$4 sm:$0xff]   ;;  %v1304_v40 = vld [vmem:[%s1777_s1 + $0xb4] ss:$8 sps:$4 sm:$0xff]  }
  0x1b   : > { %518 = vmatpush1.bf16.msra.mxu0 %v1270_v8  ;;  %590 = vmatprep.subr.bf16.mxu1 %v1301_v19  ;;  %v1298_v37 = vld [vmem:[%s1777_s1 + $0xa4] ss:$8 sps:$4 sm:$0xff]   ;;  %v1327_v38 = vld [vmem:[%s1777_s1 + $0x170] ss:$8 sps:$4 sm:$0xff]   ;;  %v1331_v41 = vld [vmem:[%s1610_s30 + $0x8] ss:$12 sps:$4 sm:$0xff]  }
  0x1c   : > { %519 = vmatprep.subr.bf16.mxu0 %v1271_v11  ;;  %543 = vmatprep.mubr.bf16.mxu0 %v1334_v35  ;;  %v1306_v42 = vld [vmem:[%s1777_s1 + $0xb0] ss:$8 sps:$4 sm:$0xff]   ;;  %v1310_v43 = vld [vmem:[%s1777_s1 + $0xc4] ss:$8 sps:$4 sm:$0xff]   ;;  %v1312_v44 = vld [vmem:[%s1777_s1 + $0xc0] ss:$8 sps:$4 sm:$0xff]  }
  0x1d   : > { %v1316_v45 = vld [vmem:[%s1777_s1 + $0xd4] ss:$8 sps:$4 sm:$0xff]   ;;  %v1335_v46 = vld [vmem:[%s1610_s30 + $0x20] ss:$12 sps:$4 sm:$0xff]   ;;  %v1318_v47 = vld [vmem:[%s1777_s1 + $0xd0] ss:$8 sps:$4 sm:$0xff]  }
  0x1e   : > { %591 = vmatpush1.bf16.msra.mxu1 %v1303_v21  ;;  %v1322_v48 = vld [vmem:[%s1777_s1 + $0xe4] ss:$8 sps:$4 sm:$0xff]   ;;  %v1324_v49 = vld [vmem:[%s1777_s1 + $0xe0] ss:$8 sps:$4 sm:$0xff]   ;;  %v1328_v50 = vld [vmem:[%s1777_s1 + $0xf4] ss:$8 sps:$4 sm:$0xff]  }
  0x1f   : > { %520 = vmatpush1.bf16.msra.mxu0 %v1273_v14  ;;  %592 = vmatprep.subr.bf16.mxu1 %v1307_v23  ;;  %v1339_v51 = vld [vmem:[%s1610_s30 + $0x38] ss:$12 sps:$4 sm:$0xff]   ;;  %v1332_v53 = vld [vmem:[%s1610_s30] ss:$12 sps:$4 sm:$0xff]   ;;  %v1336_v54 = vld [vmem:[%s1610_s30 + $0x1c] ss:$12 sps:$4 sm:$0xff]  }
  0x20   : > { %521 = vmatprep.subr.bf16.mxu0 %v1274_v15  ;;  %v1330_v52 = vld [vmem:[%s1777_s1 + $0xf0] ss:$8 sps:$4 sm:$0xff]   ;;  %v1340_v57 = vld [vmem:[%s1610_s30 + $0x34] ss:$12 sps:$4 sm:$0xff]   ;;  %s1071_s29 = sshll.u32 %s134_s28, 6  ;;  %s1146_s4 = sshll.u32 %s1484_s13, 10 }
  0x21   : > { %v1343_v55 = vld [vmem:[%s1610_s30 + $0x50] ss:$12 sps:$4 sm:$0xff]   ;;  %v1338_v56 = vld [vmem:[%s1610_s30 + $0x18] ss:$12 sps:$4 sm:$0xff]   ;;  %v1346_v60 = vld [vmem:[%s1610_s30 + $0x48] ss:$12 sps:$4 sm:$0xff]   ;;  %s1728_s8 = scalar_lea.hbm %s1778_s2, %s1146_s4 }
  0x22   : > { %593 = vmatpush1.bf16.msra.mxu1 %v1309_v25  ;;  %v1342_v58 = vld [vmem:[%s1610_s30 + $0x30] ss:$12 sps:$4 sm:$0xff]   ;;  %v1344_v59 = vld [vmem:[%s1610_s30 + $0x4c] ss:$12 sps:$4 sm:$0xff]   ;;  %s1444_s30 = smov 64   ;;  %s136_s3 = scalar_lea.vmem [#allocation2], %s1071_s29 }
  0x23   : > { %522 = vmatpush1.bf16.msra.mxu0 %v1276_v18  ;;  %594 = vmatprep.subr.bf16.mxu1 %v1313_v27  ;;  %s1005_s5 = sshll.u32 %s136_s3, 4  ;;  %s1735_s13 = scalar_lea.sflag [#allocation3], %s134_s28  ;;  %s1730_s5 = int_to_ptr.vmem [resolvable:$true] %s1005_s5 }
  0x24   : > { %523 = vmatprep.subr.bf16.mxu0 %v1277_v20  ;;  %s1379_s14 = scalar_lea.vmem %s1730_s5, 1024  ;;  %s1445_s16 = smov [#allocation2]  }
  0x25   : > { %p1380_p11 = scmp.ne.s32.totalorder %s1730_s5, %s1379_s14  ;;  %s1383_s17 = sshll.u32 %s1445_s16, 4  ;;  %s1384_s17 = int_to_ptr.vmem [resolvable:$false] %s1383_s17 }
  0x26   : > { %595 = vmatpush1.bf16.msra.mxu1 %v1315_v29  ;;  %s1385_s21 = scalar_lea.vmem %s1384_s17, 2048  ;;  %p1386_p0 = scmp.lt.s32.totalorder %s1730_s5, %s1384_s17 }
  0x27   : > { %524 = vmatpush1.bf16.msra.mxu0 %v1279_v22  ;;  %596 = vmatprep.subr.bf16.mxu1 %v1319_v31  ;;  %p1381_p12 = pnand %p1380_p11, %p1501_p5  ;;  %p1387_p1 = scmp.lt.s32.totalorder %s1385_s21, %s1379_s14 }
  0x28   : > { %525 = vmatprep.subr.bf16.mxu0 %v1280_v24 }
  0x29   : > { %p1382_p13 = pneg %p1381_p12  ;;  %p1388_p2 = por %p1387_p1, %p1386_p0 }
  0x2a   : > { %597 = vmatpush1.bf16.msra.mxu1 %v1321_v34 }
  0x2b   : > { %526 = vmatpush1.bf16.msra.mxu0 %v1282_v26  ;;  %598 = vmatprep.subr.bf16.mxu1 %v1325_v36  ;;  %p1389_p3 = pnand %p1388_p2, %p1382_p13 }
  0x2c   : > { %527 = vmatprep.subr.bf16.mxu0 %v1286_v28 }
  0x2e   : > { %599 = vmatpush1.bf16.msra.mxu1 %v1327_v38 }
  0x2f   : > { %528 = vmatpush1.bf16.msra.mxu0 %v1288_v30 }
  0x30   : > { %529 = vmatprep.subr.bf16.mxu0 %v1292_v32 }
  0x31   : > { %617 = vmatmul.mubr.bf16.vlgmr.msra.gmra.mrb[0].mxu1 %v1331_v41 }
  0x32   : > { %626 = vmatprep.mubr.bf16.mxu1 %v1443_v2 }
  0x33   : > { %530 = vmatpush1.bf16.msra.mxu0 %v1294_v33 }
  0x34   : > { %531 = vmatprep.subr.bf16.mxu0 %v1298_v37 }
  0x37   : > { %532 = vmatpush1.bf16.msra.mxu0 %v1300_v39 }
  0x38   : > { %533 = vmatprep.subr.bf16.mxu0 %v1304_v40 }
  0x39   : > { %627 = vmatmul.mubr.bf16.gmra.mrb[4].mxu1 %v1335_v46 }
  0x3a   : > { %636 = vmatprep.mubr.bf16.mxu1 %v1443_v2 }
  0x3b   : > { %534 = vmatpush1.bf16.msra.mxu0 %v1306_v42 }
  0x3c   : > { %535 = vmatprep.subr.bf16.mxu0 %v1310_v43 }
  0x3f   : > { %536 = vmatpush1.bf16.msra.mxu0 %v1312_v44 }
  0x40   : > { %537 = vmatprep.subr.bf16.mxu0 %v1316_v45 }
  0x41   : > { %637 = vmatmul.mubr.bf16.gmra.mrb[8].mxu1 %v1339_v51 }
  0x42   : > { %646 = vmatprep.mubr.bf16.mxu1 %v1443_v2 }
  0x43   : > { %538 = vmatpush1.bf16.msra.mxu0 %v1318_v47 }
  0x44   : > { %539 = vmatprep.subr.bf16.mxu0 %v1322_v48 }
  0x47   : > { %540 = vmatpush1.bf16.msra.mxu0 %v1324_v49 }
  0x48   : > { %541 = vmatprep.subr.bf16.mxu0 %v1328_v50 }
  0x49   : > { %647 = vmatmul.mubr.bf16.gmra.mrb[12].mxu1 %v1343_v55 }
  0x4b   : > { %542 = vmatpush1.bf16.msra.mxu0 %v1330_v52 }
  0x4e   : > { %544 = vmatmul.mubr.bf16.vlgmr.msra.gmra.mrb[0].mxu0 %v1332_v53 }
  0x4f   : > { %553 = vmatprep.mubr.bf16.mxu0 %v1336_v54 }
  0x56   : > { %554 = vmatmul.mubr.bf16.gmra.mrb[4].mxu0 %v1338_v56 }
  0x57   : > { %563 = vmatprep.mubr.bf16.mxu0 %v1340_v57 }
  0x5e   : > { %564 = vmatmul.mubr.bf16.gmra.mrb[8].mxu0 %v1342_v58 }
  0x5f   : > { %573 = vmatprep.mubr.bf16.mxu0 %v1344_v59 }
  0x66   : > { %574 = vmatmul.mubr.bf16.gmra.mrb[12].mxu0 %v1346_v60 }
 0x104   : > { %v618_v61 = vpop.f32.mrb[0].mxu1 }
 0x105   : > { %v620_v62 = vpop.f32.mrb[1].mxu1 }
 0x106   : > { %v622_v63 = vpop.f32.mrb[2].mxu1 }
 0x107   : > { %v624_v0 = vpop.f32.mrb[3].mxu1 }
 0x10c   : > { %v628_v1 = vpop.f32.mrb[4].mxu1 }
 0x10d   : > { %v630_v2 = vpop.f32.mrb[5].mxu1 }
 0x10e   : > { %v632_v3 = vpop.f32.mrb[6].mxu1 }
 0x10f   : > { %v634_v4 = vpop.f32.mrb[7].mxu1 }
 0x114   : > { %v638_v5 = vpop.f32.mrb[8].mxu1 }
 0x115   : > { %v640_v6 = vpop.f32.mrb[9].mxu1 }
 0x116   : > { %v642_v7 = vpop.f32.mrb[10].mxu1 }
 0x117   : > { %v644_v8 = vpop.f32.mrb[11].mxu1 }
 0x11c   : > { %v648_v16 = vpop.f32.mrb[12].mxu1 }
 0x11d   : > { %v650_v18 = vpop.f32.mrb[13].mxu1 }
 0x11e   : > { %v652_v22 = vpop.f32.mrb[14].mxu1 }
 0x11f   : > { %v654_v24 = vpop.f32.mrb[15].mxu1 }
 0x121   : > { %v545_v9 = vpop.f32.mrb[0].mxu0 }
 0x122   : > { %v619_v10 = vadd.f32 %v618_v61, %v545_v9  ;;  %v547_v11 = vpop.f32.mrb[1].mxu0  ;;  %v775_v9 = vlaneseq }
 0x123   : > { %v621_v12 = vadd.f32 %v620_v62, %v547_v11  ;;  %v549_v13 = vpop.f32.mrb[2].mxu0 }
 0x124   : > { %v623_v14 = vadd.f32 %v622_v63, %v549_v13  ;;  %v551_v15 = vpop.f32.mrb[3].mxu0  ;;  %v657_v19 = vmul.f32 0.125, %v619_v10  ;;  %v785_v11 = vand.u32 127, %v775_v9 }
 0x125   : > { %v625_v17 = vadd.f32 %v624_v0, %v551_v15 }
 0x126   : > { %v658_v20 = vmul.f32 0.125, %v623_v14  ;;  %v669_v21 = vpack.c.bf16 %v623_v14, %v619_v10  ;;  %v776_v10 = vshrl.u32 %v775_v9, 7 }
 0x127   : > { %v1678_v23 = vpack.c.bf16 %v625_v17, %v621_v12 }
 0x128   : > { %v665_v25 = vpack.c.bf16 %v658_v20, %v657_v19  ;;  %677 = vrot.lane.b32.xlu0 %v669_v21, %s1444_s30  ;;  %v778_v12 = vadd.s32 16, %v776_v10  ;;  %v777_v13 = vadd.s32 8, %v776_v10  ;;  %vm786_vm1 = vcmp.le.s32.totalorder %v785_v11, %v776_v10 }
 0x129   : > { %v555_v26 = vpop.f32.mrb[4].mxu0  ;;  %v780_v21 = vadd.s32 32, %v776_v10 }
 0x12a   : > { %v629_v27 = vadd.f32 %v628_v1, %v555_v26  ;;  %v557_v28 = vpop.f32.mrb[5].mxu0  ;;  %1171 = vmatprep.mubr.msk.bf16.mxu1 %vm685_vm0, %v665_v25  ;;  %vm788_vm2 = vcmp.le.s32.totalorder %v785_v11, %v778_v12  ;;  %vm787_vm3 = vcmp.le.s32.totalorder %v785_v11, %v777_v13  ;;  %v782_v25 = vadd.s32 48, %v776_v10 }
 0x12b   : > { %v631_v29 = vadd.f32 %v630_v2, %v557_v28  ;;  %v559_v30 = vpop.f32.mrb[6].mxu0  ;;  %v781_v26 = vadd.s32 40, %v776_v10  ;;  %vm790_vm5 = vcmp.le.s32.totalorder %v785_v11, %v780_v21 }
 0x12c   : > { %v633_v31 = vadd.f32 %v632_v3, %v559_v30  ;;  %v561_v32 = vpop.f32.mrb[7].mxu0  ;;  %v659_v34 = vmul.f32 0.125, %v629_v27  ;;  %vm792_vm6 = vcmp.le.s32.totalorder %v785_v11, %v782_v25 }
 0x12d   : > { %v635_v33 = vadd.f32 %v634_v4, %v561_v32  ;;  %vm791_vm7 = vcmp.le.s32.totalorder %v785_v11, %v781_v26 }
 0x12e   : > { %v660_v35 = vmul.f32 0.125, %v633_v31  ;;  %v670_v36 = vpack.c.bf16 %v633_v31, %v629_v27  ;;  %v783_v31 = vadd.s32 56, %v776_v10 }
 0x12f   : > { %v903_v37 = vpack.c.bf16 %v635_v33, %v631_v29 }
 0x130   : > { %v666_v38 = vpack.c.bf16 %v660_v35, %v659_v34  ;;  %679 = vrot.lane.b32.xlu0 %v670_v36, %s1444_s30  ;;  %vm793_vm8 = vcmp.le.s32.totalorder %v785_v11, %v783_v31 }
 0x131   : > { %v565_v39 = vpop.f32.mrb[8].mxu0 }
 0x132   : > { %v639_v40 = vadd.f32 %v638_v5, %v565_v39  ;;  %v567_v41 = vpop.f32.mrb[9].mxu0 }
 0x133   : > { %v641_v42 = vadd.f32 %v640_v6, %v567_v41  ;;  %v569_v43 = vpop.f32.mrb[10].mxu0 }
 0x134   : > { %v643_v44 = vadd.f32 %v642_v7, %v569_v43  ;;  %v571_v45 = vpop.f32.mrb[11].mxu0  ;;  %v661_v47 = vmul.f32 0.125, %v639_v40 }
 0x135   : > { %v645_v46 = vadd.f32 %v644_v8, %v571_v45 }
 0x136   : > { %v662_v48 = vmul.f32 0.125, %v643_v44  ;;  %v671_v49 = vpack.c.bf16 %v643_v44, %v639_v40 }
 0x137   : > { %v904_v50 = vpack.c.bf16 %v645_v46, %v641_v42 }
 0x138   : > { %v667_v51 = vpack.c.bf16 %v662_v48, %v661_v47  ;;  %681 = vrot.lane.b32.xlu1 %v671_v49, %s1444_s30 }
 0x139   : > { %v575_v52 = vpop.f32.mrb[12].mxu0 }
 0x13a   : > { %v649_v53 = vadd.f32 %v648_v16, %v575_v52  ;;  %v577_v54 = vpop.f32.mrb[13].mxu0  ;;  %v779_v16 = vadd.s32 24, %v776_v10 }
 0x13b   : > { %v651_v55 = vadd.f32 %v650_v18, %v577_v54  ;;  %v579_v56 = vpop.f32.mrb[14].mxu0 }
 0x13c   : > { %v653_v57 = vadd.f32 %v652_v22, %v579_v56  ;;  %v581_v58 = vpop.f32.mrb[15].mxu0  ;;  %v663_v60 = vmul.f32 0.125, %v649_v53  ;;  %vm789_vm4 = vcmp.le.s32.totalorder %v785_v11, %v779_v16 }
 0x13d   : > { %v655_v59 = vadd.f32 %v654_v24, %v581_v58 }
 0x13e   : > { %v664_v61 = vmul.f32 0.125, %v653_v57  ;;  %v672_v62 = vpack.c.bf16 %v653_v57, %v649_v53 }
 0x13f   : > { %v905_v63 = vpack.c.bf16 %v655_v59, %v651_v55 }
 0x140   : > { %v668_v0 = vpack.c.bf16 %v664_v61, %v663_v60  ;;  %683 = vrot.lane.b32.xlu1 %v672_v62, %s1444_s30 }
 0x19a   : > { %v678_v1 = vpop.permute.xlu0 %677 }
 0x19b   : > { %v699_v2 = vsel %vm685_vm0, %v678_v1, 0  ;;  %1211 = vmatprep.subr.msk.bf16.mxu1 %vm685_vm0, %v678_v1 }
 0x19c   : > { %1164 = vmatpush3.bf16.xpose.msra.mxu1 %v699_v2 }
 0x1a2   : > { %v680_v3 = vpop.permute.xlu0 %679 }
 0x1a3   : > { %v702_v4 = vsel %vm685_vm0, %v680_v3, 0  ;;  %1212 = vmatprep.subr.msk.bf16.mxu1 %vm685_vm0, %v680_v3 }
 0x1a4   : > { %1166 = vmatpush3.bf16.xpose.msra.mxu1 %v702_v4 }
 0x1aa   : > { %v682_v5 = vpop.permute.xlu1 %681 }
 0x1ab   : > { %v705_v6 = vsel %vm685_vm0, %v682_v5, 0  ;;  %1213 = vmatprep.subr.msk.bf16.mxu1 %vm685_vm0, %v682_v5 }
 0x1ac   : > { %1168 = vmatpush3.bf16.xpose.msra.mxu1 %v705_v6 }
 0x1b2   : > { %v684_v7 = vpop.permute.xlu1 %683 }
 0x1b3   : > { %v708_v8 = vsel %vm685_vm0, %v684_v7, 0  ;;  %1214 = vmatprep.subr.msk.bf16.mxu1 %vm685_vm0, %v684_v7 }
 0x1b4   : > { %1170 = vmatpush3.bf16.xpose.msra.mxu1 %v708_v8 }
 0x1b5   : > { %1179 = vmatprep.subr.bf16.mxu1 %v1678_v23 }
 0x1bb   : > { %1172 = vmatmul.mubr.msk.bf16.vlgmr.msra.gmra.mrb[16].mxu1 %vm685_vm0, %v666_v38 }
 0x1bc   : > { %1175 = vmatprep.mubr.msk.bf16.mxu1 %vm685_vm0, %v667_v51  ;;  %1180 = vmatpush3.bf16.msra.mxu1 %v1678_v23 }
 0x1bd   : > { %1181 = vmatprep.subr.bf16.mxu1 %v903_v37 }
 0x1c0   : > { %1182 = vmatpush3.bf16.msra.mxu1 %v903_v37 }
 0x1c1   : > { %1183 = vmatprep.subr.bf16.mxu1 %v904_v50 }
 0x1c3   : > { %1176 = vmatmul.mubr.msk.bf16.gmra.mrb[20].mxu1 %vm685_vm0, %v668_v0 }
 0x1c4   : > { %1184 = vmatpush3.bf16.msra.mxu1 %v904_v50 }
 0x1c5   : > { %1185 = vmatprep.subr.bf16.mxu1 %v905_v63 }
 0x1c8   : > { %1186 = vmatpush3.bf16.msra.mxu1 %v905_v63 }
 0x28e   : > { %v1173_v14 = vpop.f32.mrb[16].mxu1 }
 0x28f   : > { %v744_v15 = vpop.f32.mrb[17].mxu1  ;;  %v796_v22 = vsel %vm788_vm2, %v1173_v14, -1e+30 }
 0x290   : > { %v794_v17 = vsel %vm786_vm1, %v744_v15, -1e+30  ;;  %v1174_v18 = vpop.f32.mrb[18].mxu1  ;;  %v808_v27 = vsel %vm685_vm0, %v796_v22, -inf }
 0x291   : > { %v747_v19 = vpop.f32.mrb[19].mxu1  ;;  %v802_v20 = vsel %vm685_vm0, %v794_v17, -inf  ;;  %v797_v28 = vsel %vm789_vm4, %v1174_v18, -1e+30 }
 0x292   : > { %v795_v23 = vsel %vm787_vm3, %v747_v19, -1e+30  ;;  %803 = vmax.xlane.f32.xlu0 %v802_v20  ;;  %v811_v35 = vsel %vm685_vm0, %v797_v28, -inf }
 0x293   : > { %v805_v24 = vsel %vm685_vm0, %v795_v23, -inf }
 0x294   : > { %806 = vmax.xlane.f32.xlu1 %v805_v24 }
 0x296   : > { %809 = vmax.xlane.f32.xlu0 %v808_v27  ;;  %v1177_v29 = vpop.f32.mrb[20].mxu1 }
 0x297   : > { %v760_v30 = vpop.f32.mrb[21].mxu1  ;;  %v800_v37 = vsel %vm792_vm6, %v1177_v29, -1e+30 }
 0x298   : > { %v798_v32 = vsel %vm790_vm5, %v760_v30, -1e+30  ;;  %v1178_v33 = vpop.f32.mrb[22].mxu1  ;;  %v820_v39 = vsel %vm685_vm0, %v800_v37, -inf }
 0x299   : > { %v763_v34 = vpop.f32.mrb[23].mxu1  ;;  %v814_v36 = vsel %vm685_vm0, %v798_v32, -inf  ;;  %v801_v41 = vsel %vm793_vm8, %v1178_v33, -1e+30 }
 0x29a   : > { %v799_v38 = vsel %vm791_vm7, %v763_v34, -1e+30  ;;  %812 = vmax.xlane.f32.xlu0 %v811_v35  ;;  %815 = vmax.xlane.f32.xlu1 %v814_v36  ;;  %v823_v42 = vsel %vm685_vm0, %v801_v41, -inf }
 0x29b   : > { %v817_v40 = vsel %vm685_vm0, %v799_v38, -inf }
 0x29e   : > { %821 = vmax.xlane.f32.xlu1 %v820_v39  ;;  %818 = vmax.xlane.f32.xlu0 %v817_v40 }
 0x2a2   : > { %824 = vmax.xlane.f32.xlu0 %v823_v42 }
 0x31f   : > { %v804_v43 = vpop.xlane.xlu0 %803 }
 0x320   : > { %v826_v44 = vsub.f32 %v794_v17, %v804_v43 }
 0x321   : > { %v807_v45 = vpop.xlane.xlu1 %806 }
 0x322   : > { %v834_v46 = vmul.f32 1.442695, %v826_v44  ;;  %v827_v47 = vsub.f32 %v795_v23, %v807_v45 }
 0x323   : > { %v810_v48 = vpop.xlane.xlu0 %809 }
 0x324   : > { %1347 = vpow2.f32 %v834_v46  ;;  %v836_v49 = vmul.f32 1.442695, %v827_v47  ;;  %v828_v50 = vsub.f32 %v796_v22, %v810_v48 }
 0x326   : > { %1349 = vpow2.f32 %v836_v49  ;;  %v838_v51 = vmul.f32 1.442695, %v828_v50 }
 0x327   : > { %v813_v52 = vpop.xlane.xlu0 %812  ;;  %v816_v53 = vpop.xlane.xlu1 %815 }
 0x328   : > { %1351 = vpow2.f32 %v838_v51  ;;  %v829_v54 = vsub.f32 %v797_v28, %v813_v52  ;;  %v830_v55 = vsub.f32 %v798_v32, %v816_v53 }
 0x32a   : > { %v840_v56 = vmul.f32 1.442695, %v829_v54  ;;  %v842_v57 = vmul.f32 1.442695, %v830_v55 }
 0x32b   : > { %v822_v58 = vpop.xlane.xlu1 %821  ;;  %v819_v59 = vpop.xlane.xlu0 %818 }
 0x32c   : > { %1353 = vpow2.f32 %v840_v56  ;;  %v832_v60 = vsub.f32 %v800_v37, %v822_v58  ;;  %v831_v61 = vsub.f32 %v799_v38, %v819_v59 }
 0x32d   : > { %1355 = vpow2.f32 %v842_v57 }
 0x32e   : > { %v1348_v62 = vpop.eup %1347  ;;  %v846_v63 = vmul.f32 1.442695, %v832_v60  ;;  %v844_v0 = vmul.f32 1.442695, %v831_v61 }
 0x32f   : > { %v825_v1 = vpop.xlane.xlu0 %824  ;;  %v850_v2 = vsel %vm685_vm0, %v1348_v62, 0.0 }
 0x330   : > { %v1350_v3 = vpop.eup %1349  ;;  %1357 = vpow2.f32 %v846_v63  ;;  %v833_v4 = vsub.f32 %v801_v41, %v825_v1  ;;  %851 = vadd.xlane.f32.xlu1 %v850_v2 }
 0x331   : > { %1359 = vpow2.f32 %v844_v0  ;;  %v853_v5 = vsel %vm685_vm0, %v1350_v3, 0.0 }
 0x332   : > { %v1352_v6 = vpop.eup %1351  ;;  %v848_v7 = vmul.f32 1.442695, %v833_v4  ;;  %854 = vadd.xlane.f32.xlu0 %v853_v5 }
 0x333   : > { %v856_v8 = vsel %vm685_vm0, %v1352_v6, 0.0 }
 0x334   : > { %1361 = vpow2.f32 %v848_v7  ;;  %857 = vadd.xlane.f32.xlu1 %v856_v8 }
 0x336   : > { %v1354_v9 = vpop.eup %1353 }
 0x337   : > { %v1356_v10 = vpop.eup %1355  ;;  %v859_v11 = vsel %vm685_vm0, %v1354_v9, 0.0 }
 0x338   : > { %v862_v12 = vsel %vm685_vm0, %v1356_v10, 0.0  ;;  %860 = vadd.xlane.f32.xlu0 %v859_v11 }
 0x339   : > { %863 = vadd.xlane.f32.xlu1 %v862_v12 }
 0x33a   : > { %v1358_v13 = vpop.eup %1357 }
 0x33b   : > { %v1360_v14 = vpop.eup %1359  ;;  %v868_v15 = vsel %vm685_vm0, %v1358_v13, 0.0 }
 0x33c   : > { %v865_v16 = vsel %vm685_vm0, %v1360_v14, 0.0 }
 0x33d   : > { %869 = vadd.xlane.f32.xlu1 %v868_v15  ;;  %866 = vadd.xlane.f32.xlu0 %v865_v16 }
 0x33e   : > { %v1362_v17 = vpop.eup %1361 }
 0x33f   : > { %v871_v18 = vsel %vm685_vm0, %v1362_v17, 0.0 }
 0x341   : > { %872 = vadd.xlane.f32.xlu0 %v871_v18 }
 0x3bd   : > { %v852_v19 = vpop.xlane.xlu1 %851 }
 0x3be   : > { %1363 = vrcp.f32 %v852_v19 }
 0x3bf   : > { %v855_v20 = vpop.xlane.xlu0 %854 }
 0x3c0   : > { %1365 = vrcp.f32 %v855_v20 }
 0x3c1   : > { %v858_v21 = vpop.xlane.xlu1 %857 }
 0x3c2   : > { %1367 = vrcp.f32 %v858_v21 }
 0x3c5   : > { %v861_v22 = vpop.xlane.xlu0 %860 }
 0x3c6   : > { %v864_v23 = vpop.xlane.xlu1 %863  ;;  %1369 = vrcp.f32 %v861_v22 }
 0x3c7   : > { %1371 = vrcp.f32 %v864_v23 }
 0x3c8   : > { %v1364_v24 = vpop.eup %1363 }
 0x3c9   : > { %v890_v28 = vmul.f32 %v1364_v24, %v1348_v62 }
 0x3ca   : > { %v1366_v25 = vpop.eup %1365  ;;  %v870_v26 = vpop.xlane.xlu1 %869 }
 0x3cb   : > { %v867_v27 = vpop.xlane.xlu0 %866  ;;  %v891_v29 = vmul.f32 %v1366_v25, %v1350_v3 }
 0x3cc   : > { %1373 = vrcp.f32 %v867_v27  ;;  %v1368_v31 = vpop.eup %1367 }
 0x3cd   : > { %1375 = vrcp.f32 %v870_v26  ;;  %v898_v30 = vpack.c.bf16 %v891_v29, %v890_v28  ;;  %v892_v34 = vmul.f32 %v1368_v31, %v1352_v6 }
 0x3cf   : > { %v873_v32 = vpop.xlane.xlu0 %872  ;;  %1187 = vmatprep.mubr.msk.bf16.mxu1 %vm685_vm0, %v898_v30 }
 0x3d0   : > { %1377 = vrcp.f32 %v873_v32  ;;  %v1370_v33 = vpop.eup %1369 }
 0x3d1   : > { %v893_v35 = vmul.f32 %v1370_v33, %v1354_v9  ;;  %v1372_v37 = vpop.eup %1371 }
 0x3d2   : > { %v894_v40 = vmul.f32 %v1372_v37, %v1356_v10 }
 0x3d3   : > { %v899_v36 = vpack.c.bf16 %v893_v35, %v892_v34 }
 0x3d5   : > { %1188 = vmatmul.mubr.msk.bf16.vlgmr.msra.gmra.mrb[24].mxu1 %vm685_vm0, %v899_v36 }
 0x3d6   : > { %v1374_v38 = vpop.eup %1373 }
 0x3d7   : > { %v1376_v39 = vpop.eup %1375  ;;  %v895_v41 = vmul.f32 %v1374_v38, %v1360_v14 }
 0x3d8   : > { %v896_v44 = vmul.f32 %v1376_v39, %v1358_v13 }
 0x3d9   : > { %v900_v43 = vpack.c.bf16 %v895_v41, %v894_v40 }
 0x3da   : > { %v1378_v42 = vpop.eup %1377 }
 0x3db   : > { %v897_v45 = vmul.f32 %v1378_v42, %v1362_v17  ;;  %1191 = vmatprep.mubr.msk.bf16.mxu1 %vm685_vm0, %v900_v43 }
 0x3dd   : > { %v901_v46 = vpack.c.bf16 %v897_v45, %v896_v44 }
 0x3df   : > { %1192 = vmatmul.mubr.msk.bf16.gmra.mrb[28].mxu1 %vm685_vm0, %v901_v46 }
 0x4a8   : > { %v1189_v47 = vpop.f32.mrb[24].mxu1 }
 0x4a9   : > { %985 = vst.msk [vmem:[%s136_s3 + $0x10] sm:$0xff] %vm685_vm0, %v1189_v47  ;;  %v952_v48 = vpop.f32.mrb[25].mxu1 }
 0x4aa   : > { %983 = vst.msk [vmem:[%s136_s3] sm:$0xff] %vm685_vm0, %v952_v48  ;;  %v1190_v49 = vpop.f32.mrb[26].mxu1 }
 0x4ab   : > { %986 = vst.msk [vmem:[%s136_s3 + $0x18] sm:$0xff] %vm685_vm0, %v1190_v49  ;;  %v955_v50 = vpop.f32.mrb[27].mxu1 }
 0x4ac   : > { %984 = vst.msk [vmem:[%s136_s3 + $0x8] sm:$0xff] %vm685_vm0, %v955_v50 }
 0x4b2   : > { %v1193_v51 = vpop.f32.mrb[28].mxu1 }
 0x4b3   : > { %989 = vst.msk [vmem:[%s136_s3 + $0x30] sm:$0xff] %vm685_vm0, %v1193_v51  ;;  %v968_v52 = vpop.f32.mrb[29].mxu1 }
 0x4b4   : > { %987 = vst.msk [vmem:[%s136_s3 + $0x20] sm:$0xff] %vm685_vm0, %v968_v52  ;;  %v1194_v53 = vpop.f32.mrb[30].mxu1 }
 0x4b5   : > { %990 = vst.msk [vmem:[%s136_s3 + $0x38] sm:$0xff] %vm685_vm0, %v1194_v53  ;;  %v971_v54 = vpop.f32.mrb[31].mxu1 }
 0x4b6   : > { %988 = vst.msk [vmem:[%s136_s3 + $0x28] sm:$0xff] %vm685_vm0, %v971_v54 }
 0x4b7   : > { %1392 = shalt.err (!%p1389_p3)
}
 0x4b8   : > { %s1393_s22 = scalar_lea.hbm %s1728_s8, 1024  ;;  %s1397_s25 = scalar_lea.hbm %s1778_s2, 2048 }
 0x4b9   : > { %p1394_p4 = scmp.ne.s32.totalorder %s1728_s8, %s1393_s22  ;;  %p1398_p9 = scmp.lt.u32.totalorder %s1728_s8, %s1778_s2 }
 0x4ba   : > { %p1399_p10 = scmp.lt.u32.totalorder %s1397_s25, %s1393_s22  ;;  %p1401_p12 = scmp.lt.u32.totalorder %s1393_s22, %s1728_s8 }
 0x4bb   : > { %p1395_p7 = pnand %p1394_p4, %p1501_p5 }
 0x4bc   : > { %p1400_p11 = por %p1399_p10, %p1398_p9 }
 0x4bd   : > { %p1396_p8 = pneg %p1395_p7 }
 0x4be   : > { %p1402_p13 = por %p1401_p12, %p1400_p11 }
 0x4c0   : > { %p1403_p0 = pnand %p1402_p13, %p1396_p8 }
 0x4c2   : > { %1406 = shalt.err (!%p1403_p0)
}
 0x4c3   : > { %s1446_s30 = smov 128   ;;  %s1447_s28 = smov 8  }
 0x4c4   : > { %1216 = dma.vmem_to_hbm [thread:$0]  (%p1501_p5), %s1730_s5, 1024, %s1728_s8, %s1735_s13, %s1446_s30, %s1446_s30, %s1447_s28  }
 0x4c5 PF: > { %p1222_p1 = scmp.ge.s32.totalorder %s1441_s12, 2  ;;  %s1020_s29 = sand.u32 1, %s1429_s9  }
 0x4c6   : > { %s1021_s3 = scalar_lea.sflag [#allocation3], %s1020_s29 }
 0x4c7   : > { %p1219_p2 = pnand %p1222_p1, %p1505_p6 }
 0x4c9   : > { %1424 = dma.done.wait (!%p1219_p2), %s1021_s3, 1024  }
 0x4ca   : > { %1426 = vsyncadd (!%p1219_p2), %s1021_s3, 4294966272  ;;  %p12_p3 = scmp.ge.s32.totalorder %s1488_s15, 4   ;;  %s1781_s9 = smov %s1433_s10 }
 0x4cb   : > { %s1782_s10 = smov %s1437_s11  ;;  %s1783_s11 = smov %s1499_s18 }
 0x4cc   : > { %s1784_s12 = smov %s1488_s15  ;;  %14 = sbr.rel (!%p12_p3) target bundleno = 3 (0x3), region = 63 }
 0x4d3   :  { %1026 = vsyncpa [#allocation3], 1 }
 0x4d4   :  { %1028 = vsyncpa [#allocation3 + $0x1], 1 }

</bundles_post_ra>
